<compile_context>
chip_gen: v5e
topology: v5e:2x2
jax: 0.10.0
libtpu: 0.0.40
codegen_flags: <defaults>
</compile_context>

<pallas_src>
import functools

import jax
import jax.numpy as jnp
from jax.experimental import pallas as pl
from jax.experimental.pallas import tpu as pltpu


def _cdiv(a, b):
    return -(-a // b)


def _vmem_capacity_bytes():
    try:
        info = pltpu.get_tpu_info()
        for name in ("vmem_capacity_bytes", "vmem_bytes", "vmem_size_bytes"):
            v = getattr(info, name, None)
            if isinstance(v, int) and v > 0:
                return v
    except Exception:
        pass
    return 64 * 1024 * 1024          # conservative fallback (v7x per-TC)


def _num_tensorcores():
    try:
        info = pltpu.get_tpu_info()
        for name in ("num_cores", "core_count", "num_tensorcores",
                     "tensorcore_count"):
            v = getattr(info, name, None)
            if isinstance(v, int) and v > 0:
                return v
    except Exception:
        pass
    return 1                         # v5e / v6e: single TensorCore


def _dice_kernel(w_ref, p_ref, t_ref, inter_ref, p2_ref, t2_ref,
                 acc_i, acc_p, acc_t,
                 *, acc_w, block_n, n_valid, n_blocks, nk, need_mask):
    c = pl.program_id(0)
    k = pl.program_id(1)
    blk = c * nk + k                       # logical feature-block index
    n_chunks = block_n // acc_w            # static

    @pl.when(k == 0)
    def _():
        acc_i[...] = jnp.zeros_like(acc_i)
        acc_p[...] = jnp.zeros_like(acc_p)
        acc_t[...] = jnp.zeros_like(acc_t)

    # Runtime weights live in SMEM -> no retrace when they change.
    w0 = w_ref[0]
    dw = w_ref[1] - w0

    def accum_chunk(off, masked):
        lg = p_ref[:, pl.ds(off, acc_w)].astype(jnp.float32)
        tr = t_ref[:, pl.ds(off, acc_w)].astype(jnp.float32)
        if masked:
            col = (blk * block_n + off +
                   jax.lax.broadcasted_iota(jnp.int32, lg.shape, 1))
            valid = col < n_valid
            # Select (NOT multiply-by-mask): padded tail of the last block is
            # uninitialized VMEM and may hold NaN/Inf.
            lg = jnp.where(valid, lg, 0.0)
            tr = jnp.where(valid, tr, 0.0)
        w = tr * dw + w0                   # w = truth*(w1-w0) + w0
        pp = w * lg
        tt = w * tr
        # Lane-wide running sums; the cross-lane reduce happens once below.
        acc_i[...] += pp * tt
        acc_p[...] += pp * pp
        acc_t[...] += tt * tt

    def run_chunks(masked):
        if n_chunks <= 8:                  # static offsets for short loops
            for j in range(n_chunks):
                accum_chunk(j * acc_w, masked)
        else:
            @pl.loop(0, n_chunks)
            def _(j):
                accum_chunk(pl.multiple_of(j * acc_w, acc_w), masked)

    if need_mask:
        @pl.when(blk < n_blocks - 1)       # steady state: never masked
        def _():
            run_chunks(False)

        @pl.when(blk == n_blocks - 1)      # only the tail block pays the mask
        def _():
            run_chunks(True)
    else:
        run_chunks(False)

    @pl.when(k == nk - 1)
    def _():
        inter_ref[...] = acc_i[...].sum(axis=-1, keepdims=True)[None]
        p2_ref[...] = acc_p[...].sum(axis=-1, keepdims=True)[None]
        t2_ref[...] = acc_t[...].sum(axis=-1, keepdims=True)[None]


def weighted_dice_loss(logit, truth, weights=(0.5, 0.5), n_labels=1,
                       smooth=1e-5, block_n=None):
    # TODO(synk): the reference forward only defines the n_labels == 1 path.
    assert n_labels == 1
    B = logit.shape[0]
    N = logit.size // B
    p = logit.reshape(B, N)              # native dtype, free reshape, no pad
    t = truth.reshape(B, N)
    assert p.shape == t.shape

    # Sublane packing: (B, N) -> (B*pack, N//pack) is a free row-major
    # reshape; per-batch sums are recovered in the epilogue.
    pack = 1
    for cand in (1, 2, 4, 8):
        if (B * cand) % 8 == 0 and N % cand == 0:
            pack = cand
            break
    else:
        for cand in (8, 4, 2, 1):
            if N % cand == 0:
                pack = cand
                break
    R = B * pack
    Np = N // pack
    p = p.reshape(R, Np)
    t = t.reshape(R, Np)

    item_p = jnp.dtype(logit.dtype).itemsize
    item_t = jnp.dtype(truth.dtype).itemsize

    # Per-generation VMEM budget: 128 MiB -> 96 MiB limit (v5e/v6e),
    # 64 MiB -> 48 MiB limit (v7x).  ~85% of the limit is given to the
    # explicitly accounted buffers (2 inputs x 2 pipeline buffers + 3 f32
    # accumulators); the rest is headroom for compiler-internal scratch.
    vmem_cap = _vmem_capacity_bytes()
    vmem_limit = min((vmem_cap * 3) // 4, 96 * 1024 * 1024)
    budget = (vmem_limit * 17) // 20

    if Np <= 512:
        # Whole feature axis in one exact-width tile: no mask, no chunk loop.
        acc_w = Np
        chunks = 1
    else:
        acc_w = 512
        # Narrow accumulators; shrink further only if a single chunk already
        # busts the budget (very large R).
        while acc_w > 128 and (2 * R * acc_w * (item_p + item_t)
                               + 3 * R * acc_w * 4) > budget:
            acc_w //= 2
        # TODO(synk): R (= B*pack) in the many thousands would additionally
        # need a row-blocking grid axis; one 128-wide chunk is assumed to fit.
        per_chunk = 2 * R * acc_w * (item_p + item_t)   # double-buffered inputs
        acc_bytes = 3 * R * acc_w * 4
        chunks = max(1, (budget - acc_bytes) // per_chunk)
        chunks = min(chunks, Np // acc_w)               # never exceed the array
        if block_n is not None:
            chunks = max(1, min(chunks, int(block_n) // acc_w))
    bn = acc_w * chunks

    n_blocks = _cdiv(Np, bn)
    # 2-way "parallel" split only on real 2-TC parts and only when it is
    # exact, so no logical block is ever out of range (no clamp, no re-DMA).
    ncores = _num_tensorcores()
    n_split = 2 if (ncores >= 2 and n_blocks >= 8 and n_blocks % 2 == 0) else 1
    nk = n_blocks // n_split
    need_mask = (n_blocks * bn != Np)

    def in_index_map(c, k):
        return (0, c * nk + k)

    kernel = functools.partial(
        _dice_kernel, acc_w=acc_w, block_n=bn, n_valid=Np,
        n_blocks=n_blocks, nk=nk, need_mask=need_mask)

    part_shape = jax.ShapeDtypeStruct((n_split, R, 1), jnp.float32)
    part_spec = pl.BlockSpec((1, R, 1), lambda c, k: (c, 0, 0))
    wts = jnp.asarray([weights[0], weights[1]], dtype=jnp.float32)

    inter, psum, tsum = pl.pallas_call(
        kernel,
        out_shape=(part_shape, part_shape, part_shape),
        grid_spec=pltpu.PrefetchScalarGridSpec(
            num_scalar_prefetch=0,
            grid=(n_split, nk),
            in_specs=[
                pl.BlockSpec(memory_space=pltpu.MemorySpace.SMEM),  # (2,) weights
                pl.BlockSpec((R, bn), in_index_map),
                pl.BlockSpec((R, bn), in_index_map),
            ],
            out_specs=(part_spec, part_spec, part_spec),
            scratch_shapes=[
                pltpu.VMEM((R, acc_w), jnp.float32),  # sum(p*t), lane-wide
                pltpu.VMEM((R, acc_w), jnp.float32),  # sum(p*p), lane-wide
                pltpu.VMEM((R, acc_w), jnp.float32),  # sum(t*t), lane-wide
            ],
        ),
        compiler_params=pltpu.CompilerParams(
            dimension_semantics=("parallel", "arbitrary"),
            vmem_limit_bytes=int(vmem_limit)),
    )(wts, p, t)

    # Tiny O(B) epilogue: combine per-core / per-packed-row partial sums.
    inter = inter.reshape(n_split, B, pack).sum(axis=(0, 2))
    union = (psum.reshape(n_split, B, pack).sum(axis=(0, 2)) +
             tsum.reshape(n_split, B, pack).sum(axis=(0, 2)))
    dice = 1.0 - (2.0 * inter + smooth) / (union + smooth)
    return dice.mean()


def _reference(logit, truth, weights=(0.5, 0.5), smooth=1e-5):
    B = logit.shape[0]
    p = logit.reshape(B, -1).astype(jnp.float32)
    t = truth.reshape(B, -1).astype(jnp.float32)
    w = t * (weights[1] - weights[0]) + weights[0]
    p = w * p
    t = w * t
    intersection = (p * t).sum(-1)
    union = (p * p).sum(-1) + (t * t).sum(-1)
    dice = 1.0 - (2.0 * intersection + smooth) / (union + smooth)
    return dice.mean()


if __name__ == "__main__":
    key = jax.random.PRNGKey(0)
    k1, k2, k3, k4, k5, k6 = jax.random.split(key, 6)

    # Case 1: small NCHW inputs (B=2, C=4, 16x16) -> single exact tile path.
    logit1 = jax.nn.sigmoid(jax.random.normal(k1, (2, 4, 16, 16), jnp.float32))
    truth1 = (jax.random.uniform(k2, (2, 4, 16, 16)) > 0.5).astype(jnp.float32)

    # Case 2: ragged feature width (N=5883) -> multi-block + masked tail.
    logit2 = jax.nn.sigmoid(jax.random.normal(k3, (2, 3, 37, 53), jnp.float32))
    truth2 = (jax.random.uniform(k4, (2, 3, 37, 53)) > 0.5).astype(jnp.float32)

    # Case 3: bf16 logits AND bf16 truth streamed in native (narrow) dtypes.
    logit3 = jax.nn.sigmoid(
        jax.random.normal(k5, (4, 4, 8, 8), jnp.float32)).astype(jnp.bfloat16)
    truth3 = (jax.random.uniform(k6, (4, 4, 8, 8)) > 0.5).astype(jnp.bfloat16)

    cases = [
        (logit1, truth1, (0.5, 0.5), None),   # single tile, no mask
        (logit2, truth2, (0.3, 0.7), 1024),   # forced small tiles + chunk loop
        (logit2, truth2, (0.3, 0.7), None),   # auto (large) tiles + masked tail
        (logit3, truth3, (0.5, 0.5), None),   # bf16 streaming
    ]
    for lg, tr, w, bn in cases:
        loss = weighted_dice_loss(lg, tr, weights=w, n_labels=1, block_n=bn)
        loss = jax.block_until_ready(loss)
        ref = _reference(lg, tr, weights=w)
        assert jnp.allclose(loss, ref, rtol=1e-5, atol=1e-6), (loss, ref)
    print("KERNEL_OK")
</pallas_src>

<mosaic_0001>
module attributes {stable_mosaic.version = 11 : i64} {
  func.func @_dice_kernel(%arg0: i32, %arg1: i32, %arg2: memref<2xf32, #tpu.memory_space<smem>>, %arg3: memref<8x256xf32, #tpu.memory_space<vmem>>, %arg4: memref<8x256xf32, #tpu.memory_space<vmem>>, %arg5: memref<1x8x1xf32, #tpu.memory_space<vmem>>, %arg6: memref<1x8x1xf32, #tpu.memory_space<vmem>>, %arg7: memref<1x8x1xf32, #tpu.memory_space<vmem>>, %arg8: memref<8x256xf32, #tpu.memory_space<vmem>>, %arg9: memref<8x256xf32, #tpu.memory_space<vmem>>, %arg10: memref<8x256xf32, #tpu.memory_space<vmem>>) attributes {dimension_semantics = [#tpu.dimension_semantics<parallel>, #tpu.dimension_semantics<arbitrary>], iteration_bounds = array<i64: 1, 1>, scalar_prefetch = 0 : i64, scratch_operands = 3 : i64, tpu.core_type = #tpu.core_type<tc>, window_params = [{transform_indices = @transform_0, window_bounds = array<i64: 2>}, {transform_indices = @transform_1, window_bounds = array<i64: 8, 256>}, {transform_indices = @transform_2, window_bounds = array<i64: 8, 256>}, {transform_indices = @transform_3, window_bounds = array<i64: 1, 8, 1>}, {transform_indices = @transform_4, window_bounds = array<i64: 1, 8, 1>}, {transform_indices = @transform_5, window_bounds = array<i64: 1, 8, 1>}]} {
    %c0_i32 = arith.constant 0 : i32
    %0 = arith.cmpi eq, %arg1, %c0_i32 : i32
    %1 = arith.extui %0 : i1 to i32
    %c0_i32_0 = arith.constant 0 : i32
    %2 = arith.cmpi ne, %1, %c0_i32_0 : i32
    scf.if %2 {
      %cst = arith.constant 0.000000e+00 : f32
      %29 = vector.broadcast %cst : f32 to vector<8x256xf32>
      %c0_19 = arith.constant 0 : index
      %c0_20 = arith.constant 0 : index
      %30 = vector.load %arg8[%c0_19, %c0_20] : memref<8x256xf32, #tpu.memory_space<vmem>>, vector<8x256xf32>
      tpu.vector_store %arg8[%c0_19, %c0_20], %29 {strides = array<i32>} : memref<8x256xf32, #tpu.memory_space<vmem>>, vector<8x256xf32>,
      %cst_21 = arith.constant 0.000000e+00 : f32
      %31 = vector.broadcast %cst_21 : f32 to vector<8x256xf32>
      %c0_22 = arith.constant 0 : index
      %c0_23 = arith.constant 0 : index
      %32 = vector.load %arg9[%c0_22, %c0_23] : memref<8x256xf32, #tpu.memory_space<vmem>>, vector<8x256xf32>
      tpu.vector_store %arg9[%c0_22, %c0_23], %31 {strides = array<i32>} : memref<8x256xf32, #tpu.memory_space<vmem>>, vector<8x256xf32>,
      %cst_24 = arith.constant 0.000000e+00 : f32
      %33 = vector.broadcast %cst_24 : f32 to vector<8x256xf32>
      %c0_25 = arith.constant 0 : index
      %c0_26 = arith.constant 0 : index
      %34 = vector.load %arg10[%c0_25, %c0_26] : memref<8x256xf32, #tpu.memory_space<vmem>>, vector<8x256xf32>
      tpu.vector_store %arg10[%c0_25, %c0_26], %33 {strides = array<i32>} : memref<8x256xf32, #tpu.memory_space<vmem>>, vector<8x256xf32>,
    } else {
    }
    %c0 = arith.constant 0 : index
    %3 = memref.load %arg2[%c0] : memref<2xf32, #tpu.memory_space<smem>>
    %c1 = arith.constant 1 : index
    %4 = memref.load %arg2[%c1] : memref<2xf32, #tpu.memory_space<smem>>
    %5 = arith.subf %4, %3 : f32
    %c0_1 = arith.constant 0 : index
    %c0_2 = arith.constant 0 : index
    %6 = vector.load %arg3[%c0_1, %c0_2] : memref<8x256xf32, #tpu.memory_space<vmem>>, vector<8x256xf32>
    %c0_3 = arith.constant 0 : index
    %c0_4 = arith.constant 0 : index
    %7 = vector.load %arg4[%c0_3, %c0_4] : memref<8x256xf32, #tpu.memory_space<vmem>>, vector<8x256xf32>
    %8 = vector.broadcast %5 : f32 to vector<8x256xf32>
    %9 = arith.mulf %7, %8 : vector<8x256xf32>
    %10 = vector.broadcast %3 : f32 to vector<8x256xf32>
    %11 = arith.addf %9, %10 : vector<8x256xf32>
    %12 = arith.mulf %11, %6 : vector<8x256xf32>
    %13 = arith.mulf %11, %7 : vector<8x256xf32>
    %c0_5 = arith.constant 0 : index
    %c0_6 = arith.constant 0 : index
    %14 = vector.load %arg8[%c0_5, %c0_6] : memref<8x256xf32, #tpu.memory_space<vmem>>, vector<8x256xf32>
    %15 = arith.mulf %12, %13 : vector<8x256xf32>
    %16 = arith.addf %14, %15 : vector<8x256xf32>
    %c0_7 = arith.constant 0 : index
    %c0_8 = arith.constant 0 : index
    %17 = vector.load %arg8[%c0_7, %c0_8] : memref<8x256xf32, #tpu.memory_space<vmem>>, vector<8x256xf32>
    tpu.vector_store %arg8[%c0_7, %c0_8], %16 {strides = array<i32>} : memref<8x256xf32, #tpu.memory_space<vmem>>, vector<8x256xf32>,
    %c0_9 = arith.constant 0 : index
    %c0_10 = arith.constant 0 : index
    %18 = vector.load %arg9[%c0_9, %c0_10] : memref<8x256xf32, #tpu.memory_space<vmem>>, vector<8x256xf32>
    %19 = arith.mulf %12, %12 : vector<8x256xf32>
    %20 = arith.addf %18, %19 : vector<8x256xf32>
    %c0_11 = arith.constant 0 : index
    %c0_12 = arith.constant 0 : index
    %21 = vector.load %arg9[%c0_11, %c0_12] : memref<8x256xf32, #tpu.memory_space<vmem>>, vector<8x256xf32>
    tpu.vector_store %arg9[%c0_11, %c0_12], %20 {strides = array<i32>} : memref<8x256xf32, #tpu.memory_space<vmem>>, vector<8x256xf32>,
    %c0_13 = arith.constant 0 : index
    %c0_14 = arith.constant 0 : index
    %22 = vector.load %arg10[%c0_13, %c0_14] : memref<8x256xf32, #tpu.memory_space<vmem>>, vector<8x256xf32>
    %23 = arith.mulf %13, %13 : vector<8x256xf32>
    %24 = arith.addf %22, %23 : vector<8x256xf32>
    %c0_15 = arith.constant 0 : index
    %c0_16 = arith.constant 0 : index
    %25 = vector.load %arg10[%c0_15, %c0_16] : memref<8x256xf32, #tpu.memory_space<vmem>>, vector<8x256xf32>
    tpu.vector_store %arg10[%c0_15, %c0_16], %24 {strides = array<i32>} : memref<8x256xf32, #tpu.memory_space<vmem>>, vector<8x256xf32>,
    %c0_i32_17 = arith.constant 0 : i32
    %26 = arith.cmpi eq, %arg1, %c0_i32_17 : i32
    %27 = arith.extui %26 : i1 to i32
    %c0_i32_18 = arith.constant 0 : i32
    %28 = arith.cmpi ne, %27, %c0_i32_18 : i32
    scf.if %28 {
      %c0_19 = arith.constant 0 : index
      %c0_20 = arith.constant 0 : index
      %29 = vector.load %arg8[%c0_19, %c0_20] : memref<8x256xf32, #tpu.memory_space<vmem>>, vector<8x256xf32>
      %cst = arith.constant dense<0.000000e+00> : vector<8xf32>
      %30 = vector.multi_reduction <add>, %29, %cst [1] : vector<8x256xf32> to vector<8xf32>
      %31 = vector.shape_cast %30 : vector<8xf32> to vector<8x1xf32>
      %32 = vector.shape_cast %31 : vector<8x1xf32> to vector<1x8x1xf32>
      %c0_21 = arith.constant 0 : index
      %c0_22 = arith.constant 0 : index
      %c0_23 = arith.constant 0 : index
      %33 = vector.load %arg5[%c0_21, %c0_22, %c0_23] : memref<1x8x1xf32, #tpu.memory_space<vmem>>, vector<1x8x1xf32>
      tpu.vector_store %arg5[%c0_21, %c0_22, %c0_23], %32 {strides = array<i32>} : memref<1x8x1xf32, #tpu.memory_space<vmem>>, vector<1x8x1xf32>,
      %c0_24 = arith.constant 0 : index
      %c0_25 = arith.constant 0 : index
      %34 = vector.load %arg9[%c0_24, %c0_25] : memref<8x256xf32, #tpu.memory_space<vmem>>, vector<8x256xf32>
      %cst_26 = arith.constant dense<0.000000e+00> : vector<8xf32>
      %35 = vector.multi_reduction <add>, %34, %cst_26 [1] : vector<8x256xf32> to vector<8xf32>
      %36 = vector.shape_cast %35 : vector<8xf32> to vector<8x1xf32>
      %37 = vector.shape_cast %36 : vector<8x1xf32> to vector<1x8x1xf32>
      %c0_27 = arith.constant 0 : index
      %c0_28 = arith.constant 0 : index
      %c0_29 = arith.constant 0 : index
      %38 = vector.load %arg6[%c0_27, %c0_28, %c0_29] : memref<1x8x1xf32, #tpu.memory_space<vmem>>, vector<1x8x1xf32>
      tpu.vector_store %arg6[%c0_27, %c0_28, %c0_29], %37 {strides = array<i32>} : memref<1x8x1xf32, #tpu.memory_space<vmem>>, vector<1x8x1xf32>,
      %c0_30 = arith.constant 0 : index
      %c0_31 = arith.constant 0 : index
      %39 = vector.load %arg10[%c0_30, %c0_31] : memref<8x256xf32, #tpu.memory_space<vmem>>, vector<8x256xf32>
      %cst_32 = arith.constant dense<0.000000e+00> : vector<8xf32>
      %40 = vector.multi_reduction <add>, %39, %cst_32 [1] : vector<8x256xf32> to vector<8xf32>
      %41 = vector.shape_cast %40 : vector<8xf32> to vector<8x1xf32>
      %42 = vector.shape_cast %41 : vector<8x1xf32> to vector<1x8x1xf32>
      %c0_33 = arith.constant 0 : index
      %c0_34 = arith.constant 0 : index
      %c0_35 = arith.constant 0 : index
      %43 = vector.load %arg7[%c0_33, %c0_34, %c0_35] : memref<1x8x1xf32, #tpu.memory_space<vmem>>, vector<1x8x1xf32>
      tpu.vector_store %arg7[%c0_33, %c0_34, %c0_35], %42 {strides = array<i32>} : memref<1x8x1xf32, #tpu.memory_space<vmem>>, vector<1x8x1xf32>,
    } else {
    }
    return
  }
  func.func @transform_0(%arg0: i32, %arg1: i32) -> i32 {
    %c0_i32 = arith.constant 0 : i32
    %c0_i32_0 = arith.constant 0 : i32
    return %c0_i32 : i32
  }
  func.func @transform_1(%arg0: i32, %arg1: i32) -> (i32, i32) {
    %c1_i32 = arith.constant 1 : i32
    %0 = arith.muli %arg0, %c1_i32 : i32
    %1 = arith.addi %0, %arg1 : i32
    %c0_i32 = arith.constant 0 : i32
    %c0_i32_0 = arith.constant 0 : i32
    return %c0_i32, %1 : i32, i32
  }
  func.func @transform_2(%arg0: i32, %arg1: i32) -> (i32, i32) {
    %c1_i32 = arith.constant 1 : i32
    %0 = arith.muli %arg0, %c1_i32 : i32
    %1 = arith.addi %0, %arg1 : i32
    %c0_i32 = arith.constant 0 : i32
    %c0_i32_0 = arith.constant 0 : i32
    return %c0_i32, %1 : i32, i32
  }
  func.func @transform_3(%arg0: i32, %arg1: i32) -> (i32, i32, i32) {
    %c0_i32 = arith.constant 0 : i32
    %c0_i32_0 = arith.constant 0 : i32
    %c0_i32_1 = arith.constant 0 : i32
    return %arg0, %c0_i32, %c0_i32_0 : i32, i32, i32
  }
  func.func @transform_4(%arg0: i32, %arg1: i32) -> (i32, i32, i32) {
    %c0_i32 = arith.constant 0 : i32
    %c0_i32_0 = arith.constant 0 : i32
    %c0_i32_1 = arith.constant 0 : i32
    return %arg0, %c0_i32, %c0_i32_0 : i32, i32, i32
  }
  func.func @transform_5(%arg0: i32, %arg1: i32) -> (i32, i32, i32) {
    %c0_i32 = arith.constant 0 : i32
    %c0_i32_0 = arith.constant 0 : i32
    %c0_i32_1 = arith.constant 0 : i32
    return %arg0, %c0_i32, %c0_i32_0 : i32, i32, i32
  }
}

</mosaic_0001>

<bundles_post_ra>
// kernel: tpu_custom_call.1
= control target key start
LH: loop header
LB: loop body
LE: loop exit
PB: predicated region body
PF: predicated region fallthrough
CT: control target
= control target key end

     0   :  { %11 = vsyncpa [#allocation7], 0  ;;  %s279_s0 = inlined_call_operand.hbm [shape: f32[2], index: 0, kind: input, shape index: {}]   ;;  %s280_s1 = inlined_call_operand.hbm [shape: f32[8,256], index: 1, kind: input, shape index: {}]   ;;  %s281_s2 = inlined_call_operand.hbm [shape: f32[8,256], index: 2, kind: input, shape index: {}]   ;;  %s282_s3 = inlined_call_operand.vmem [shape: f32[1,8,1], index: 3, kind: output, shape index: {0}]   ;;  %s283_s4 = inlined_call_operand.vmem [shape: f32[1,8,1], index: 4, kind: output, shape index: {1}]   ;;  %s284_s5 = inlined_call_operand.vmem [shape: f32[1,8,1], index: 5, kind: output, shape index: {2}]  }
   0x1   :  { %12 = vsyncpa [#allocation6], 0  ;;  %s19_s20 = sshll.u32 %s279_s0, 4  ;;  %s20_s20 = int_to_ptr.hbm [resolvable:$true] %s19_s20 }
   0x2   :  { %13 = vsyncpa [#allocation10], 0  ;;  %s32_s23 = sshll.u32 %s280_s1, 4  ;;  %s228_s24 = smov [#allocation5]   ;;  %s33_s23 = int_to_ptr.hbm [resolvable:$true] %s32_s23 }
   0x3   :  { %22 = dma.hbm_to_smem %s20_s20, 16, %s228_s24, [#allocation7]  }
   0x4   :  { %s229_s25 = smov [#allocation8]   ;;  %s47_s29 = sshll.u32 %s281_s2, 4  ;;  %s48_s29 = int_to_ptr.hbm [resolvable:$true] %s47_s29 }
   0x5   :  { %s34_s26 = sshll.u32 %s229_s25, 4  ;;  %s230_s30 = smov [#allocation9]   ;;  %s35_s26 = int_to_ptr.vmem [resolvable:$true] %s34_s26 }
   0x6   :  { %37 = dma.hbm_to_vmem [thread:$0]  %s33_s23, 256, %s35_s26, [#allocation6]  }
   0x7   :  { %s49_s0 = sshll.u32 %s230_s30, 4  ;;  %s50_s0 = int_to_ptr.vmem [resolvable:$true] %s49_s0 }
   0x8   :  { %52 = dma.hbm_to_vmem [thread:$0]  %s48_s29, 256, %s50_s0, [#allocation10]  }
   0x9   :  { %222 = dma.done.wait [#allocation7], 16  }
   0xa   :  { %223 = vsyncadd [#allocation7], 4294967280 }
   0xb   :  { %224 = dma.done.wait [#allocation6], 256  }
   0xc   :  { %225 = vsyncadd [#allocation6], 4294967040 }
   0xd   :  { %226 = dma.done.wait [#allocation10], 256  }
   0xe   :  { %227 = vsyncadd [#allocation10], 4294967040 }
   0xf   :  { %65 = sfence }
  0x10   :  { %s80_s1 = sld [smem:[#allocation5]]  ;;  %v85_v0 = vld [vmem:[#allocation9] sm:$0xff]  ;;  %v86_v1 = vld [vmem:[#allocation9 + $0x8] sm:$0xff]  ;;  %v83_v6 = vld [vmem:[#allocation8] sm:$0xff]  ;;  %vm129_vm0 = vcmask 7168  }
  0x11   :  { %s158_s6 = sld [smem:[#allocation5 + $0x1]]  ;;  %v84_v7 = vld [vmem:[#allocation8 + $0x8] sm:$0xff] }
  0x16   :  { %v90_v3 = vstv %s80_s1 }
  0x17   :  { %s82_s7 = ssub.f32 %s158_s6, %s80_s1 }
  0x19   :  { %v87_v2 = vstv %s82_s7 }
  0x1a   :  { %v88_v4 = vmul.f32 %v87_v2, %v85_v0  ;;  %v89_v5 = vmul.f32 %v87_v2, %v86_v1 }
  0x1c   :  { %v91_v8 = vadd.f32 %v90_v3, %v88_v4  ;;  %v92_v9 = vadd.f32 %v90_v3, %v89_v5 }
  0x1e   :  { %v93_v10 = vmul.f32 %v91_v8, %v83_v6  ;;  %v94_v11 = vmul.f32 %v92_v9, %v84_v7  ;;  %v95_v12 = vmul.f32 %v91_v8, %v85_v0  ;;  %v96_v13 = vmul.f32 %v92_v9, %v86_v1 }
  0x20   :  { %v99_v14 = vmul.f32 %v95_v12, %v93_v10  ;;  %v100_v15 = vmul.f32 %v96_v13, %v94_v11  ;;  %v115_v16 = vmul.f32 %v95_v12, %v95_v12  ;;  %v116_v17 = vmul.f32 %v96_v13, %v96_v13 }
  0x21   :  { %v107_v20 = vmul.f32 %v93_v10, %v93_v10  ;;  %v108_v21 = vmul.f32 %v94_v11, %v94_v11 }
  0x22   :  { %v126_v18 = vadd.f32 %v100_v15, %v99_v14  ;;  %v139_v19 = vadd.f32 %v116_v17, %v115_v16 }
  0x23   :  { %v133_v22 = vadd.f32 %v108_v21, %v107_v20 }
  0x24   :  { %127 = vadd.xlane.f32.xlu0 %v126_v18  ;;  %140 = vadd.xlane.f32.xlu1 %v139_v19 }
  0x2c   :  { %134 = vadd.xlane.f32.xlu0 %v133_v22 }
  0x97   :  { %v128_v23 = vpop.xlane.xlu0 %127  ;;  %v141_v24 = vpop.xlane.xlu1 %140 }
  0x98   :  { %130 = vst.msk [vmem:[%s282_s3] sm:$0xff] %vm129_vm0, %v128_v23 }
  0x99   :  { %142 = vst.msk [vmem:[%s284_s5] sm:$0xff] %vm129_vm0, %v141_v24 }
  0x9f   :  { %v135_v25 = vpop.xlane.xlu0 %134 }
  0xa0   :  { %136 = vst.msk [vmem:[%s283_s4] sm:$0xff] %vm129_vm0, %v135_v25 }
  0xa1   :  { %155 = vsyncpa [#allocation6], 1 }
  0xa2   :  { %156 = vsyncpa [#allocation10], 1 }
  0xa3   :  { %157 = vsyncpa [#allocation7], 1 }

</bundles_post_ra>
